<compile_context>
chip_gen: v5e
topology: v5e:2x2
jax: 0.10.0
libtpu: 0.0.40
codegen_flags: <defaults>
</compile_context>

<pallas_src>
import functools
import math

import jax
import jax.numpy as jnp
from jax.experimental import pallas as pl
from jax.experimental.pallas import tpu as pltpu

EPS = 1e-8
_LANES = 128
_SUBLANES = 8


def _cdiv(a, b):
    return -(-a // b)


def _round_up(x, m):
    return _cdiv(x, m) * m


def _vmem_budget():
    """Generation-aware VMEM budget. v5e/v6e: 128 MiB physical; v7x: 64 MiB."""
    try:
        phys = int(pltpu.get_tpu_info().vmem_capacity_bytes)
    except Exception:
        phys = 64 * 1024 * 1024  # conservative fallback (safe on all generations)
    vmem_limit = min(max(phys // 2, 16 * 1024 * 1024), 64 * 1024 * 1024)
    block_budget = (3 * vmem_limit) // 4  # ~24 MiB on v7x, ~48 MiB on v5e/v6e
    return vmem_limit, block_budget


def _pick_tile_rows(num_rows, row_width, dtype_bytes, block_budget):
    """Pick the row-tile size.

    Budget covers double-buffered in/out blocks plus f32 upcast temporaries.
    Prefer several grid steps (pipelining + both v7x TensorCores) only when
    each step still moves >= ~2 MiB; small problems get one exact block
    (a block dim equal to the full array dim is always legal, so no padding
    and no ragged masking is needed).
    """
    per_row = 2 * 2 * row_width * dtype_bytes + 6 * row_width * 4
    budget_rows = max(_SUBLANES, (block_budget // max(per_row, 1)) // _SUBLANES * _SUBLANES)

    min_rows = max(
        _SUBLANES,
        ((2 * 1024 * 1024) // max(row_width * dtype_bytes, 1)) // _SUBLANES * _SUBLANES,
    )

    tile = budget_rows
    if num_rows >= 8 * min_rows:
        # >= 8 grid steps (>= 4 per v7x TensorCore) with >= ~2 MiB per step.
        tile = min(tile, max(min_rows, _round_up(_cdiv(num_rows, 8), _SUBLANES)))
    elif num_rows >= 2 * min_rows:
        # Enough work for two decent steps (both v7x TCs participate).
        tile = min(tile, _round_up(_cdiv(num_rows, 2), _SUBLANES))

    if num_rows <= tile:
        return max(int(num_rows), 1)  # single exact block, no masking needed
    return max(int(tile), _SUBLANES)


def _layernorm_rowwise_kernel(x_ref, w_ref, b_ref, o_ref):
    """General path (dim >= 128 or not a divisor of 128): one logical row per block row."""
    x = x_ref[...].astype(jnp.float32)                       # (tile, dim)
    mean = jnp.mean(x, axis=-1, keepdims=True)
    xc = x - mean
    var = jnp.mean(xc * xc, axis=-1, keepdims=True)          # biased variance (F.layer_norm)
    inv = jax.lax.rsqrt(var + EPS)
    if o_ref.dtype == jnp.bfloat16:
        # bf16 epilogue: stats stay f32, elementwise tail runs at half vreg cost.
        w = w_ref[...].astype(jnp.bfloat16)
        b = b_ref[...].astype(jnp.bfloat16)
        o_ref[...] = (xc.astype(jnp.bfloat16) * inv.astype(jnp.bfloat16) * w + b).astype(o_ref.dtype)
    else:
        w = w_ref[...].astype(jnp.float32)
        b = b_ref[...].astype(jnp.float32)
        o_ref[...] = (xc * inv * w + b).astype(o_ref.dtype)


def _layernorm_packed_kernel(x_ref, w_ref, b_ref, seg_ref, o_ref, *, dim):
    """Lane-dense path: each 128-lane row packs k = 128 // dim logical rows.

    Per-logical-row sums are a segmented reduction via a resident (128,128)
    block-diagonal 0/1 matrix on the MXU.  Instead of f32 HIGHEST matmuls, x is
    split into bf16 hi/lo parts (x = x_hi + x_lo to ~2^-18 relative error) so
    each segmented sum is two single-pass bf16 MXU matmuls with f32 accumulate.
    """
    x = x_ref[...].astype(jnp.float32)                       # (tile, 128)
    seg = seg_ref[...]                                       # (128, 128) bf16 0/1, resident
    inv_dim = jnp.float32(1.0 / dim)

    x_hi = x.astype(jnp.bfloat16)
    x_lo = (x - x_hi.astype(jnp.float32)).astype(jnp.bfloat16)
    ssum = (jnp.dot(x_hi, seg, preferred_element_type=jnp.float32)
            + jnp.dot(x_lo, seg, preferred_element_type=jnp.float32))
    mean = ssum * inv_dim

    xc = x - mean
    sq = xc * xc
    sq_hi = sq.astype(jnp.bfloat16)
    sq_lo = (sq - sq_hi.astype(jnp.float32)).astype(jnp.bfloat16)
    ssq = (jnp.dot(sq_hi, seg, preferred_element_type=jnp.float32)
           + jnp.dot(sq_lo, seg, preferred_element_type=jnp.float32))
    var = ssq * inv_dim                                       # biased variance
    inv = jax.lax.rsqrt(var + EPS)

    if o_ref.dtype == jnp.bfloat16:
        w = w_ref[...].astype(jnp.bfloat16)
        b = b_ref[...].astype(jnp.bfloat16)
        o_ref[...] = (xc.astype(jnp.bfloat16) * inv.astype(jnp.bfloat16) * w + b).astype(o_ref.dtype)
    else:
        w = w_ref[...].astype(jnp.float32)                    # (1, 128) = weight tiled k times
        b = b_ref[...].astype(jnp.float32)
        o_ref[...] = (xc * inv * w + b).astype(o_ref.dtype)


def layer_norm(x, weight, bias):
    """LayerNorm over the last axis of x, with per-feature scale and bias."""
    orig_shape = x.shape
    dim = orig_shape[-1]
    assert weight.shape == (dim,) and bias.shape == (dim,)

    rows = math.prod(orig_shape[:-1])
    x2 = x.reshape(rows, dim)                 # row-major reshape: layout bitcast, free
    dtype_bytes = jnp.dtype(x.dtype).itemsize

    vmem_limit, block_budget = _vmem_budget()

    pack = (dim < _LANES) and (_LANES % dim == 0)
    if pack:
        # Pack k logical rows per 128-lane row -> lane-dense DMAs and stores.
        k = _LANES // dim
        width = _LANES
        rows_padded = _round_up(rows, k)
        if rows_padded != rows:
            # Tiny remainder pad (< k rows) only; large inputs with rows % k == 0 never pad.
            x2 = jnp.pad(x2, ((0, rows_padded - rows), (0, 0)))
        n_rows_eff = rows_padded // k
        x_in = x2.reshape(n_rows_eff, width)  # (R, dim) -> (R/k, 128): free bitcast
        w_in = jnp.tile(weight, k).reshape(1, width)
        b_in = jnp.tile(bias, k).reshape(1, width)
        # Hoisted block-diagonal segment matrix (exact in bf16), resident in VMEM.
        lane = jnp.arange(_LANES, dtype=jnp.int32)
        seg = (lane[:, None] // dim == lane[None, :] // dim).astype(jnp.bfloat16)
        kernel = functools.partial(_layernorm_packed_kernel, dim=dim)
        args = (x_in, w_in, b_in, seg)
        extra_in_specs = [pl.BlockSpec((_LANES, _LANES), lambda i: (0, 0))]
        extra_flops = 2 * 2 * n_rows_eff * width * width
        transcendentals = n_rows_eff * width
    else:
        width = dim
        rows_padded = rows
        n_rows_eff = rows
        x_in = x2
        w_in = weight.reshape(1, dim)
        b_in = bias.reshape(1, dim)
        kernel = _layernorm_rowwise_kernel
        args = (x_in, w_in, b_in)
        extra_in_specs = []
        extra_flops = 0
        transcendentals = n_rows_eff

    tile = _pick_tile_rows(n_rows_eff, width, dtype_bytes, block_budget)
    grid = (pl.cdiv(n_rows_eff, tile),)

    cost = pl.CostEstimate(
        flops=int(8 * n_rows_eff * width + extra_flops),
        transcendentals=int(transcendentals),
        bytes_accessed=int(2 * n_rows_eff * width * dtype_bytes + 2 * dim * 4),
    )

    out = pl.pallas_call(
        kernel,
        out_shape=jax.ShapeDtypeStruct((n_rows_eff, width), x.dtype),
        grid_spec=pltpu.PrefetchScalarGridSpec(
            num_scalar_prefetch=0,
            grid=grid,
            in_specs=[
                pl.BlockSpec((tile, width), lambda i: (i, 0)),
                pl.BlockSpec((1, width), lambda i: (0, 0)),
                pl.BlockSpec((1, width), lambda i: (0, 0)),
            ] + extra_in_specs,
            out_specs=pl.BlockSpec((tile, width), lambda i: (i, 0)),
        ),
        compiler_params=pltpu.CompilerParams(
            dimension_semantics=("parallel",),
            vmem_limit_bytes=int(vmem_limit),
        ),
        cost_estimate=cost,
    )(*args)

    if pack:
        out = out.reshape(rows_padded, dim)
        if rows_padded != rows:
            out = out[:rows]   # only the tiny remainder case pays this slice
    return out.reshape(orig_shape)


if __name__ == "__main__":
    key = jax.random.PRNGKey(0)
    k1, k2 = jax.random.split(key)

    def reference(x, w, b):
        mean = jnp.mean(x, axis=-1, keepdims=True)
        var = jnp.mean((x - mean) ** 2, axis=-1, keepdims=True)
        return (x - mean) / jnp.sqrt(var + EPS) * w + b

    # Case 1: module config LayerNorm(dim=32) -> lane-dense packed path.
    batch, seq, dim = 2, 8, 32
    x = jax.random.normal(k1, (batch, seq, dim), dtype=jnp.float32)
    # nn.Parameter(torch.ones(dim)) / torch.zeros(dim); perturbed slightly so
    # scale/bias actually get exercised while staying deterministic.
    weight = jnp.ones((dim,), dtype=jnp.float32) + 0.01 * jnp.arange(dim, dtype=jnp.float32)
    bias = jnp.zeros((dim,), dtype=jnp.float32) + 0.001 * jnp.arange(dim, dtype=jnp.float32)
    y = jax.block_until_ready(layer_norm(x, weight, bias))
    ref = reference(x, weight, bias)
    assert y.shape == x.shape
    assert jnp.allclose(y, ref, atol=1e-5, rtol=1e-5), "packed-path mismatch vs reference"

    # Case 2: wide-dim rowwise path with a non-multiple-of-8 row count (no padding).
    batch2, seq2, dim2 = 2, 9, 256
    x2 = jax.random.normal(k2, (batch2, seq2, dim2), dtype=jnp.float32)
    w2 = jnp.ones((dim2,), dtype=jnp.float32) + 0.005 * jnp.arange(dim2, dtype=jnp.float32)
    b2 = 0.002 * jnp.arange(dim2, dtype=jnp.float32)
    y2 = jax.block_until_ready(layer_norm(x2, w2, b2))
    ref2 = reference(x2, w2, b2)
    assert y2.shape == x2.shape
    assert jnp.allclose(y2, ref2, atol=1e-5, rtol=1e-5), "rowwise-path mismatch vs reference"

    print("KERNEL_OK")
</pallas_src>

<mosaic_0001>
module attributes {stable_mosaic.version = 11 : i64} {
  func.func @_layernorm_packed_kernel(%arg0: i32, %arg1: memref<4x128xf32, #tpu.memory_space<vmem>>, %arg2: memref<1x128xf32, #tpu.memory_space<vmem>>, %arg3: memref<1x128xf32, #tpu.memory_space<vmem>>, %arg4: memref<128x128xbf16, #tpu.memory_space<vmem>>, %arg5: memref<4x128xf32, #tpu.memory_space<vmem>>) attributes {dimension_semantics = [#tpu.dimension_semantics<parallel>], iteration_bounds = array<i64: 1>, scalar_prefetch = 0 : i64, scratch_operands = 0 : i64, tpu.core_type = #tpu.core_type<tc>, window_params = [{transform_indices = @transform_0, window_bounds = array<i64: 4, 128>}, {pipeline_mode = #tpu.pipeline_mode<synchronous>, transform_indices = @transform_1, window_bounds = array<i64: 1, 128>}, {pipeline_mode = #tpu.pipeline_mode<synchronous>, transform_indices = @transform_2, window_bounds = array<i64: 1, 128>}, {pipeline_mode = #tpu.pipeline_mode<synchronous>, transform_indices = @transform_3, window_bounds = array<i64: 128, 128>}, {transform_indices = @transform_4, window_bounds = array<i64: 4, 128>}]} {
    %c0 = arith.constant 0 : index
    %c0_0 = arith.constant 0 : index
    %0 = vector.load %arg1[%c0, %c0_0] : memref<4x128xf32, #tpu.memory_space<vmem>>, vector<4x128xf32>
    %c0_1 = arith.constant 0 : index
    %c0_2 = arith.constant 0 : index
    %1 = vector.load %arg4[%c0_1, %c0_2] : memref<128x128xbf16, #tpu.memory_space<vmem>>, vector<128x128xbf16>
    %2 = arith.truncf %0 : vector<4x128xf32> to vector<4x128xbf16>
    %3 = arith.extf %2 : vector<4x128xbf16> to vector<4x128xf32>
    %4 = arith.subf %0, %3 : vector<4x128xf32>
    %5 = arith.truncf %4 : vector<4x128xf32> to vector<4x128xbf16>
    %cst = arith.constant dense<0.000000e+00> : vector<4x128xf32>
    %6 = tpu.matmul %2, %1, %cst {dimension_numbers = #tpu.dot_dimension_numbers<[1], [0], [0], [1], [0, 0, 1, 1], [], []>} : vector<4x128xbf16>, vector<128x128xbf16>, vector<4x128xf32> -> vector<4x128xf32>
    %cst_3 = arith.constant dense<0.000000e+00> : vector<4x128xf32>
    %7 = tpu.matmul %5, %1, %cst_3 {dimension_numbers = #tpu.dot_dimension_numbers<[1], [0], [0], [1], [0, 0, 1, 1], [], []>} : vector<4x128xbf16>, vector<128x128xbf16>, vector<4x128xf32> -> vector<4x128xf32>
    %8 = arith.addf %6, %7 : vector<4x128xf32>
    %cst_4 = arith.constant 3.125000e-02 : f32
    %9 = vector.broadcast %cst_4 : f32 to vector<4x128xf32>
    %10 = arith.mulf %8, %9 : vector<4x128xf32>
    %11 = arith.subf %0, %10 : vector<4x128xf32>
    %12 = arith.mulf %11, %11 : vector<4x128xf32>
    %13 = arith.truncf %12 : vector<4x128xf32> to vector<4x128xbf16>
    %14 = arith.extf %13 : vector<4x128xbf16> to vector<4x128xf32>
    %15 = arith.subf %12, %14 : vector<4x128xf32>
    %16 = arith.truncf %15 : vector<4x128xf32> to vector<4x128xbf16>
    %cst_5 = arith.constant dense<0.000000e+00> : vector<4x128xf32>
    %17 = tpu.matmul %13, %1, %cst_5 {dimension_numbers = #tpu.dot_dimension_numbers<[1], [0], [0], [1], [0, 0, 1, 1], [], []>} : vector<4x128xbf16>, vector<128x128xbf16>, vector<4x128xf32> -> vector<4x128xf32>
    %cst_6 = arith.constant dense<0.000000e+00> : vector<4x128xf32>
    %18 = tpu.matmul %16, %1, %cst_6 {dimension_numbers = #tpu.dot_dimension_numbers<[1], [0], [0], [1], [0, 0, 1, 1], [], []>} : vector<4x128xbf16>, vector<128x128xbf16>, vector<4x128xf32> -> vector<4x128xf32>
    %19 = arith.addf %17, %18 : vector<4x128xf32>
    %cst_7 = arith.constant 3.125000e-02 : f32
    %20 = vector.broadcast %cst_7 : f32 to vector<4x128xf32>
    %21 = arith.mulf %19, %20 : vector<4x128xf32>
    %cst_8 = arith.constant 9.99999993E-9 : f32
    %22 = vector.broadcast %cst_8 : f32 to vector<4x128xf32>
    %23 = arith.addf %21, %22 : vector<4x128xf32>
    %24 = math.rsqrt %23 : vector<4x128xf32>
    %c0_9 = arith.constant 0 : index
    %c0_10 = arith.constant 0 : index
    %25 = vector.load %arg2[%c0_9, %c0_10] : memref<1x128xf32, #tpu.memory_space<vmem>>, vector<1x128xf32>
    %c0_11 = arith.constant 0 : index
    %c0_12 = arith.constant 0 : index
    %26 = vector.load %arg3[%c0_11, %c0_12] : memref<1x128xf32, #tpu.memory_space<vmem>>, vector<1x128xf32>
    %27 = arith.mulf %11, %24 : vector<4x128xf32>
    %28 = vector.broadcast %25 : vector<1x128xf32> to vector<4x128xf32>
    %29 = arith.mulf %27, %28 : vector<4x128xf32>
    %30 = vector.broadcast %26 : vector<1x128xf32> to vector<4x128xf32>
    %31 = arith.addf %29, %30 : vector<4x128xf32>
    %c0_13 = arith.constant 0 : index
    %c0_14 = arith.constant 0 : index
    %32 = vector.load %arg5[%c0_13, %c0_14] : memref<4x128xf32, #tpu.memory_space<vmem>>, vector<4x128xf32>
    tpu.vector_store %arg5[%c0_13, %c0_14], %31 {strides = array<i32>} : memref<4x128xf32, #tpu.memory_space<vmem>>, vector<4x128xf32>,
    return
  }
  func.func @transform_0(%arg0: i32) -> (i32, i32) {
    %c0_i32 = arith.constant 0 : i32
    %c0_i32_0 = arith.constant 0 : i32
    return %arg0, %c0_i32 : i32, i32
  }
  func.func @transform_1(%arg0: i32) -> (i32, i32) {
    %c0_i32 = arith.constant 0 : i32
    %c0_i32_0 = arith.constant 0 : i32
    %c0_i32_1 = arith.constant 0 : i32
    return %c0_i32, %c0_i32_0 : i32, i32
  }
  func.func @transform_2(%arg0: i32) -> (i32, i32) {
    %c0_i32 = arith.constant 0 : i32
    %c0_i32_0 = arith.constant 0 : i32
    %c0_i32_1 = arith.constant 0 : i32
    return %c0_i32, %c0_i32_0 : i32, i32
  }
  func.func @transform_3(%arg0: i32) -> (i32, i32) {
    %c0_i32 = arith.constant 0 : i32
    %c0_i32_0 = arith.constant 0 : i32
    %c0_i32_1 = arith.constant 0 : i32
    return %c0_i32, %c0_i32_0 : i32, i32
  }
  func.func @transform_4(%arg0: i32) -> (i32, i32) {
    %c0_i32 = arith.constant 0 : i32
    %c0_i32_0 = arith.constant 0 : i32
    return %arg0, %c0_i32 : i32, i32
  }
}

</mosaic_0001>

<bundles_post_ra>
// kernel: tpu_custom_call.1
= control target key start
LH: loop header
LB: loop body
LE: loop exit
PB: predicated region body
PF: predicated region fallthrough
CT: control target
= control target key end

     0   :  { %9 = vsyncpa [#allocation3], 0  ;;  %s429_s0 = inlined_call_operand.hbm [shape: f32[4,128], index: 0, kind: input, shape index: {}]   ;;  %s430_s1 = inlined_call_operand.hbm [shape: f32[1,128], index: 1, kind: input, shape index: {}]   ;;  %s431_s2 = inlined_call_operand.vmem [shape: f32[1,128], index: 2, kind: input, shape index: {}]   ;;  %s432_s3 = inlined_call_operand.hbm [shape: bf16[128,128], index: 3, kind: input, shape index: {}]   ;;  %s433_s4 = inlined_call_operand.hbm [shape: f32[4,128], index: 4, kind: output, shape index: {}]  }
   0x1   :  { %10 = vsyncpa [#allocation6], 0  ;;  %s28_s17 = sshll.u32 %s430_s1, 4  ;;  %s29_s17 = int_to_ptr.hbm [resolvable:$true] %s28_s17 }
   0x2   :  { %11 = vsyncpa [#allocation4], 0  ;;  %s383_s18 = smov [#allocation5]   ;;  %s17_s22 = sshll.u32 %s429_s0, 4  ;;  %s18_s22 = int_to_ptr.hbm [resolvable:$true] %s17_s22 }
   0x3   :  { %s30_s19 = sshll.u32 %s383_s18, 4  ;;  %s384_s23 = smov [#allocation2]   ;;  %s31_s19 = int_to_ptr.vmem [resolvable:$true] %s30_s19 }
   0x4   :  { %33 = dma.hbm_to_vmem [thread:$0]  %s29_s17, 16, %s31_s19, [#allocation6]  }
   0x5   :  { %s19_s24 = sshll.u32 %s384_s23, 4  ;;  %s40_s27 = sshll.u32 %s432_s3, 4  ;;  %s20_s24 = int_to_ptr.vmem [resolvable:$true] %s19_s24  ;;  %s41_s27 = int_to_ptr.hbm [resolvable:$true] %s40_s27 }
   0x6   :  { %22 = dma.hbm_to_vmem [thread:$0]  %s18_s22, 64, %s20_s24, [#allocation3]  }
   0x7   :  { %s385_s1 = smov [#allocation7]   ;;  %s386_s29 = smov 64  }
   0x8   :  { %s42_s28 = sshll.u32 %s385_s1, 4  ;;  %s387_s30 = smov 4   ;;  %s43_s28 = int_to_ptr.vmem [resolvable:$true] %s42_s28 }
   0x9   :  { %48 = dma.hbm_to_vmem [thread:$0]  %s41_s27, 1024, %s43_s28, [#allocation6], %s386_s29, %s386_s29, %s387_s30  }
   0xa   :  { %377 = dma.done.wait [#allocation3], 64  }
   0xb   :  { %378 = vsyncadd [#allocation3], 4294967232 }
   0xc   :  { %379 = dma.done.wait [#allocation6], 1040  }
   0xd   :  { %380 = vsyncadd [#allocation6], 4294966256  ;;  %v270_v0 = vld [vmem:[#allocation7 + $0x38] sm:$0xff]  ;;  %v269_v1 = vld [vmem:[#allocation7 + $0x30] sm:$0xff]  ;;  %s388_s5 = smov [#allocation8]   ;;  %s220_s9 = sshll.u32 %s433_s4, 4  ;;  %s221_s9 = int_to_ptr.hbm [resolvable:$true] %s220_s9 }
   0xe   :  { %130 = vmatpush.bf16.msra.mxu0 %v270_v0  ;;  %143 = vmatpush.bf16.msra.mxu1 %v270_v0  ;;  %v268_v2 = vld [vmem:[#allocation7 + $0x28] sm:$0xff]  ;;  %v267_v3 = vld [vmem:[#allocation7 + $0x20] sm:$0xff]  ;;  %v266_v4 = vld [vmem:[#allocation7 + $0x18] sm:$0xff]  ;;  %s218_s6 = sshll.u32 %s388_s5, 4  ;;  %s219_s6 = int_to_ptr.vmem [resolvable:$true] %s218_s6 }
   0xf   :  { %176 = vmatpush.bf16.msra.mxu3 %v270_v0  ;;  %163 = vmatpush.bf16.msra.mxu2 %v270_v0  ;;  %v61_v5 = vld [vmem:[#allocation2] sm:$0xf]  ;;  %v265_v7 = vld [vmem:[#allocation7 + $0x10] sm:$0xff]  ;;  %v264_v9 = vld [vmem:[#allocation7 + $0x8] sm:$0xff] }
  0x10   :  { %v78_v6 = vpack.c.bf16 %v61_v5, %v61_v5  ;;  %v263_v11 = vld [vmem:[#allocation7] sm:$0xff]  ;;  %v277_v38 = vld [vmem:[#allocation5] ss:$0 sm:$0xff]  ;;  %v278_v41 = vld [vmem:[%s431_s2] ss:$0 sm:$0xff] }
  0x12   :  { %131 = vmatpush.bf16.msra.mxu0 %v269_v1  ;;  %144 = vmatpush.bf16.msra.mxu1 %v269_v1  ;;  %v79_v8 = vunpack.c.l.bf16 %v78_v6 }
  0x13   :  { %177 = vmatpush.bf16.msra.mxu3 %v269_v1  ;;  %164 = vmatpush.bf16.msra.mxu2 %v269_v1 }
  0x14   :  { %v80_v10 = vsub.f32 %v61_v5, %v79_v8 }
  0x16   :  { %132 = vmatpush.bf16.msra.mxu0 %v268_v2  ;;  %145 = vmatpush.bf16.msra.mxu1 %v268_v2  ;;  %v81_v12 = vpack.c.bf16 %v80_v10, %v80_v10 }
  0x17   :  { %178 = vmatpush.bf16.msra.mxu3 %v268_v2  ;;  %165 = vmatpush.bf16.msra.mxu2 %v268_v2 }
  0x1a   :  { %133 = vmatpush.bf16.msra.mxu0 %v267_v3  ;;  %146 = vmatpush.bf16.msra.mxu1 %v267_v3 }
  0x1b   :  { %179 = vmatpush.bf16.msra.mxu3 %v267_v3  ;;  %166 = vmatpush.bf16.msra.mxu2 %v267_v3 }
  0x1e   :  { %134 = vmatpush.bf16.msra.mxu0 %v266_v4  ;;  %147 = vmatpush.bf16.msra.mxu1 %v266_v4 }
  0x1f   :  { %180 = vmatpush.bf16.msra.mxu3 %v266_v4  ;;  %167 = vmatpush.bf16.msra.mxu2 %v266_v4 }
  0x22   :  { %135 = vmatpush.bf16.msra.mxu0 %v265_v7  ;;  %148 = vmatpush.bf16.msra.mxu1 %v265_v7 }
  0x23   :  { %181 = vmatpush.bf16.msra.mxu3 %v265_v7  ;;  %168 = vmatpush.bf16.msra.mxu2 %v265_v7 }
  0x26   :  { %136 = vmatpush.bf16.msra.mxu0 %v264_v9  ;;  %149 = vmatpush.bf16.msra.mxu1 %v264_v9 }
  0x27   :  { %182 = vmatpush.bf16.msra.mxu3 %v264_v9  ;;  %169 = vmatpush.bf16.msra.mxu2 %v264_v9 }
  0x2a   :  { %137 = vmatpush.bf16.msra.mxu0 %v263_v11  ;;  %150 = vmatpush.bf16.msra.mxu1 %v263_v11 }
  0x2b   :  { %183 = vmatpush.bf16.msra.mxu3 %v263_v11  ;;  %170 = vmatpush.bf16.msra.mxu2 %v263_v11 }
  0x2d   :  { %138 = vmatmul.bf16.vlgmr.msra.gmra.mxu0 %v81_v12  ;;  %151 = vmatmul.bf16.vlgmr.msra.gmra.mxu1 %v78_v6 }
  0xaa   :  { %v139_v13 = vpop.f32.mrf.mxu0  ;;  %v152_v14 = vpop.f32.mrf.mxu1 }
  0xab   :  { %v153_v15 = vadd.f32 %v152_v14, %v139_v13 }
  0xad   :  { %v156_v16 = vmul.f32 0.03125, %v153_v15 }
  0xaf   :  { %v157_v17 = vsub.f32 %v61_v5, %v156_v16 }
  0xb1   :  { %v158_v18 = vmul.f32 %v157_v17, %v157_v17 }
  0xb2   :  { %v141_v19 = vpop.f32.mrf.mxu0  ;;  %v154_v20 = vpop.f32.mrf.mxu1 }
  0xb3   :  { %v159_v21 = vpack.c.bf16 %v158_v18, %v158_v18 }
  0xb5   :  { %v160_v22 = vunpack.c.l.bf16 %v159_v21  ;;  %184 = vmatmul.bf16.vlgmr.msra.gmra.mxu3 %v159_v21 }
  0xb7   :  { %v161_v23 = vsub.f32 %v158_v18, %v160_v22 }
  0xb9   :  { %v162_v24 = vpack.c.bf16 %v161_v23, %v161_v23 }
  0xbb   :  { %171 = vmatmul.bf16.vlgmr.msra.gmra.mxu2 %v162_v24 }
 0x138   :  { %v185_v25 = vpop.f32.mrf.mxu3 }
 0x13e   :  { %v172_v26 = vpop.f32.mrf.mxu2 }
 0x13f   :  { %v186_v27 = vadd.f32 %v185_v25, %v172_v26 }
 0x140   :  { %v187_v28 = vpop.f32.mrf.mxu3 }
 0x141   :  { %v189_v29 = vmul.f32 0.03125, %v186_v27 }
 0x143   :  { %v190_v30 = vadd.f32 1e-08, %v189_v29 }
 0x145   :  { %279 = vrsqrt.f32 %v190_v30  ;;  %vm197_vm1 = vweird.f32 %v190_v30 }
 0x146   :  { %v174_v31 = vpop.f32.mrf.mxu2 }
 0x14b   :  { %v280_v32 = vpop.eup %279 }
 0x14c   :  { %v192_v33 = vmul.f32 %v280_v32, %v190_v30  ;;  %vm198_vm0 = vweird.f32 %v280_v32 }
 0x14d   :  { %vm199_vm2 = vmor %vm197_vm1, %vm198_vm0 }
 0x14e   :  { %v193_v34 = vmul.f32 %v280_v32, %v192_v33 }
 0x150   :  { %v194_v35 = vmul.f32 0.5, %v193_v34 }
 0x152   :  { %v195_v36 = vsub.f32 1.5, %v194_v35 }
 0x154   :  { %v196_v37 = vmul.f32 %v280_v32, %v195_v36 }
 0x156   :  { %v200_v39 = vsel %vm199_vm2, %v280_v32, %v196_v37 }
 0x157   :  { %v203_v40 = vmul.f32 %v200_v39, %v157_v17 }
 0x159   :  { %v207_v42 = vmul.f32 %v277_v38, %v203_v40 }
 0x15b   :  { %v211_v43 = vadd.f32 %v278_v41, %v207_v42 }
 0x15d   :  { %212 = vst [vmem:[#allocation8] sm:$0xf] %v211_v43 }
 0x15e   :  { %223 = dma.vmem_to_hbm [thread:$0]  %s219_s6, 64, %s221_s9, [#allocation4]  }
 0x15f   :  { %381 = dma.done.wait [#allocation4], 64  }
 0x160   :  { %382 = vsyncadd [#allocation4], 4294967232 }
 0x161   :  { %228 = vsyncpa [#allocation3], 1 }
 0x162   :  { %229 = vsyncpa [#allocation6], 1 }
 0x163   :  { %230 = vsyncpa [#allocation4], 1 }

</bundles_post_ra>
